<compile_context>
chip_gen: v7x
topology: tpu7x:2x2x1
jax: 0.10.0
libtpu: 0.0.40
codegen_flags: <defaults>
</compile_context>

<pallas_src>
import functools

import jax
import jax.numpy as jnp
from jax.experimental import pallas as pl
from jax.experimental.pallas import tpu as pltpu


def _transform_kernel(x_ref, w_ref, norm_ref, m_ref):
    # x_ref:    (tile_n, Fin)        node-feature row tile
    # w_ref:    (Fin, D*H*Fout)      all (division, head) weights, columns in (d, h, fout) order
    # norm_ref: (tile_n, 1)          per-node norm (source side)
    # m_ref:    (tile_n, D*H*Fout)   transformed features, lane-dense output slab
    #
    # (X @ W) * norm == (X * norm) @ W -> fold the per-source-node norm into X once, then one
    # wide MXU matmul produces every head/division feature transform simultaneously.
    m_ref[...] = jnp.dot(x_ref[...] * norm_ref[...], w_ref[...],
                         preferred_element_type=jnp.float32)


def _aggregate_kernel(a_ref, m_ref, norm_dst_ref, o_ref, acc_ref, *, num_divisions, hf):
    # a_ref:        (D, tile_dst, tile_src)   dense adjacency A[d, dst, src] for this tile pair
    # m_ref:        (tile_src, D*H*Fout)      transformed source features (columns (d, h, fout))
    # norm_dst_ref: (tile_dst, 1)             per-node norm restricted to this destination tile
    # o_ref:        (tile_dst, D*H*Fout)      output slab (written on the last src step only)
    # acc_ref:      (tile_dst, D*H*Fout) f32  accumulator, resident across the src grid axis
    k = pl.program_id(1)

    @pl.when(k == 0)
    def _():
        acc_ref[...] = jnp.zeros_like(acc_ref)

    # Per-division aggregation over in-edges: H_d += A[d] @ M_d.  D is small & static ->
    # Python unroll so the LLO scheduler sees the whole body; one full-width accumulate/store.
    m = m_ref[...]
    contribs = []
    for d in range(num_divisions):
        contribs.append(jnp.dot(a_ref[d], m[:, d * hf:(d + 1) * hf],
                                preferred_element_type=jnp.float32))
    acc_ref[...] += jnp.concatenate(contribs, axis=-1)

    # Post-merge "* norm" + relu, single lane-dense store (D*H*Fout = 128 lanes at toy sizes).
    @pl.when(k == pl.num_programs(1) - 1)
    def _():
        o_ref[...] = jnp.maximum(acc_ref[...] * norm_dst_ref[...], 0.0)


def geomgcn_forward(x, weights, adj, norm, *, tile_n=None, tile_dst=None, tile_src=None):
    """x: (N, Fin) f32, weights: (H, D, Fin, Fout) f32, adj: (D, N, N) f32, norm: (N, 1) f32.

    Returns (N, H * D * Fout) f32  (ggcn_merge='cat', channel_merge='cat', relu activation).
    """
    N, Fin = x.shape
    H, D, _, Fout = weights.shape
    HF = H * Fout
    DHF = D * HF

    if tile_n is None:
        tile_n = min(N, 512)
    if tile_dst is None:
        tile_dst = min(N, 256)
    if tile_src is None:
        tile_src = min(N, 512)
    tile_n, tile_dst, tile_src = min(tile_n, N), min(tile_dst, N), min(tile_src, N)
    assert N % tile_n == 0 and (tile_n == N or tile_n % 8 == 0)
    assert N % tile_dst == 0 and (tile_dst == N or tile_dst % 8 == 0)
    assert N % tile_src == 0 and (tile_src == N or tile_src % 128 == 0), \
        "tile_src is the lane dim of the adjacency block: multiple of 128 or == N"

    # Weight columns in (division, head, fout) order so each division's slice is contiguous.
    w_ker = jnp.transpose(weights, (2, 1, 0, 3)).reshape(Fin, DHF)

    # ---- Stage 1: fused feature transform, computed exactly once over all nodes. ----
    m_all = pl.pallas_call(
        _transform_kernel,
        out_shape=jax.ShapeDtypeStruct((N, DHF), jnp.float32),
        grid=(N // tile_n,),
        in_specs=[
            pl.BlockSpec((tile_n, Fin), lambda i: (i, 0)),     # X row tile
            pl.BlockSpec((Fin, DHF), lambda i: (0, 0)),        # W_all (constant block, DMA'd once)
            pl.BlockSpec((tile_n, 1), lambda i: (i, 0)),       # norm (source side)
        ],
        out_specs=pl.BlockSpec((tile_n, DHF), lambda i: (i, 0)),
        compiler_params=pltpu.CompilerParams(
            dimension_semantics=("parallel",)),
    )(x, w_ker, norm)

    # ---- Stage 2: per-division neighbourhood aggregation, tiled over (dst, src). ----
    out_perm = pl.pallas_call(
        functools.partial(_aggregate_kernel, num_divisions=D, hf=HF),
        out_shape=jax.ShapeDtypeStruct((N, DHF), jnp.float32),
        grid=(N // tile_dst, N // tile_src),
        in_specs=[
            pl.BlockSpec((D, tile_dst, tile_src), lambda i, k: (0, i, k)),  # A tile
            pl.BlockSpec((tile_src, DHF), lambda i, k: (k, 0)),             # M src tile
            pl.BlockSpec((tile_dst, 1), lambda i, k: (i, 0)),               # norm (dst side)
        ],
        out_specs=pl.BlockSpec((tile_dst, DHF), lambda i, k: (i, 0)),
        scratch_shapes=[pltpu.VMEM((tile_dst, DHF), jnp.float32)],
        compiler_params=pltpu.CompilerParams(
            dimension_semantics=("parallel", "arbitrary")),
    )(adj, m_all, norm)

    # Cheap wrapper-side column permutation: kernel layout (d, h, fout) -> module layout
    # (h, d, fout) = cat over divisions inside each head, then cat over heads.
    return out_perm.reshape(N, D, H, Fout).transpose(0, 2, 1, 3).reshape(N, H * D * Fout)


def geomgcn_reference(x, weights, adj, norm):
    H, D = weights.shape[0], weights.shape[1]
    head_outs = []
    for h in range(H):
        per_div = []
        for d in range(D):
            m = (x @ weights[h, d]) * norm
            per_div.append(adj[d] @ m)
        hh = jnp.concatenate(per_div, axis=-1)   # ggcn_merge = 'cat'
        hh = jax.nn.relu(hh * norm)
        head_outs.append(hh)
    return jnp.concatenate(head_outs, axis=1)    # channel_merge = 'cat'


if __name__ == "__main__":
    # Small synthetic graph / model sizes (H * D * F_OUT = 128 -> lane-dense output slab).
    N = 256         # number of nodes (2 dst tiles x 2 src tiles -> exercises both grid axes)
    F_IN = 32       # in_feats
    F_OUT = 16      # out_feats
    D = 4           # num_divisions
    H = 2           # num_heads

    key = jax.random.PRNGKey(0)
    k_x, k_w, k_e, k_div, k_norm = jax.random.split(key, 5)

    # Node features.
    x = jax.random.normal(k_x, (N, F_IN), dtype=jnp.float32)

    # Xavier-uniform weights for each (head, division) linear layer (bias=False).
    bound = jnp.sqrt(6.0 / (F_IN + F_OUT)).astype(jnp.float32)
    weights = jax.random.uniform(k_w, (H, D, F_IN, F_OUT),
                                 minval=-bound, maxval=bound, dtype=jnp.float32)

    # Deterministic synthetic graph: sparse random edges, each assigned a division index.
    edge_prob = jax.random.uniform(k_e, (N, N))
    edge_mask = (edge_prob < 0.15).astype(jnp.float32)          # A[dst, src]
    div_assign = jax.random.randint(k_div, (N, N), 0, D)
    adj = jnp.stack(
        [edge_mask * (div_assign == d).astype(jnp.float32) for d in range(D)],
        axis=0)                                                  # (D, N, N)

    # Per-node norm (as precomputed in g.ndata['norm'] in Geom-GCN): 1/sqrt(in_degree + 1).
    in_deg = jnp.sum(edge_mask, axis=1, keepdims=True)
    norm = 1.0 / jnp.sqrt(in_deg + 1.0)                          # (N, 1)

    out = geomgcn_forward(x, weights, adj, norm, tile_n=128, tile_dst=128, tile_src=128)
    out = jax.block_until_ready(out)

    ref = geomgcn_reference(x, weights, adj, norm)
    assert out.shape == (N, H * D * F_OUT)
    assert jnp.allclose(out, ref, atol=1e-3, rtol=1e-3), "mismatch vs JAX reference"

    print("KERNEL_OK")
</pallas_src>

<mosaic_0001>
module attributes {stable_mosaic.version = 11 : i64} {
  func.func @_transform_kernel(%arg0: i32, %arg1: memref<128x32xf32, #tpu.memory_space<vmem>>, %arg2: memref<32x128xf32, #tpu.memory_space<vmem>>, %arg3: memref<128x1xf32, #tpu.memory_space<vmem>>, %arg4: memref<128x128xf32, #tpu.memory_space<vmem>>) attributes {dimension_semantics = [#tpu.dimension_semantics<parallel>], iteration_bounds = array<i64: 2>, scalar_prefetch = 0 : i64, scratch_operands = 0 : i64, tpu.core_type = #tpu.core_type<tc>, window_params = [{transform_indices = @transform_0, window_bounds = array<i64: 128, 32>}, {pipeline_mode = #tpu.pipeline_mode<synchronous>, transform_indices = @transform_1, window_bounds = array<i64: 32, 128>}, {transform_indices = @transform_2, window_bounds = array<i64: 128, 1>}, {transform_indices = @transform_3, window_bounds = array<i64: 128, 128>}]} {
    %c0 = arith.constant 0 : index
    %c0_0 = arith.constant 0 : index
    %0 = vector.load %arg1[%c0, %c0_0] : memref<128x32xf32, #tpu.memory_space<vmem>>, vector<128x32xf32>
    %c0_1 = arith.constant 0 : index
    %c0_2 = arith.constant 0 : index
    %1 = vector.load %arg3[%c0_1, %c0_2] : memref<128x1xf32, #tpu.memory_space<vmem>>, vector<128x1xf32>
    %2 = vector.broadcast %1 : vector<128x1xf32> to vector<128x32xf32>
    %3 = arith.mulf %0, %2 : vector<128x32xf32>
    %c0_3 = arith.constant 0 : index
    %c0_4 = arith.constant 0 : index
    %4 = vector.load %arg2[%c0_3, %c0_4] : memref<32x128xf32, #tpu.memory_space<vmem>>, vector<32x128xf32>
    %cst = arith.constant dense<0.000000e+00> : vector<128x128xf32>
    %5 = tpu.matmul %3, %4, %cst {dimension_numbers = #tpu.dot_dimension_numbers<[1], [0], [0], [1], [0, 0, 1, 1], [], []>} : vector<128x32xf32>, vector<32x128xf32>, vector<128x128xf32> -> vector<128x128xf32>
    %c0_5 = arith.constant 0 : index
    %c0_6 = arith.constant 0 : index
    %6 = vector.load %arg4[%c0_5, %c0_6] : memref<128x128xf32, #tpu.memory_space<vmem>>, vector<128x128xf32>
    tpu.vector_store %arg4[%c0_5, %c0_6], %5 {strides = array<i32>} : memref<128x128xf32, #tpu.memory_space<vmem>>, vector<128x128xf32>,
    return
  }
  func.func @transform_0(%arg0: i32) -> (i32, i32) {
    %c0_i32 = arith.constant 0 : i32
    %c0_i32_0 = arith.constant 0 : i32
    return %arg0, %c0_i32 : i32, i32
  }
  func.func @transform_1(%arg0: i32) -> (i32, i32) {
    %c0_i32 = arith.constant 0 : i32
    %c0_i32_0 = arith.constant 0 : i32
    %c0_i32_1 = arith.constant 0 : i32
    return %c0_i32, %c0_i32_0 : i32, i32
  }
  func.func @transform_2(%arg0: i32) -> (i32, i32) {
    %c0_i32 = arith.constant 0 : i32
    %c0_i32_0 = arith.constant 0 : i32
    return %arg0, %c0_i32 : i32, i32
  }
  func.func @transform_3(%arg0: i32) -> (i32, i32) {
    %c0_i32 = arith.constant 0 : i32
    %c0_i32_0 = arith.constant 0 : i32
    return %arg0, %c0_i32 : i32, i32
  }
}

</mosaic_0001>

<bundles_post_ra>
// kernel: tpu_custom_call.1
= control target key start
LH: loop header
LB: loop body
LE: loop exit
PB: predicated region body
PF: predicated region fallthrough
CT: control target
= control target key end

     0   :  { %8 = vsyncpa [#allocation3], 0  ;;  %s1050_s0 = inlined_call_operand.vmem [shape: f32[256,32], index: 0, kind: input, shape index: {}]   ;;  %s1051_s1 = inlined_call_operand.vmem [shape: f32[32,128], index: 1, kind: input, shape index: {}]   ;;  %s1052_s2 = inlined_call_operand.vmem [shape: f32[256,1], index: 2, kind: input, shape index: {}]   ;;  %s1053_s3 = inlined_call_operand.hbm [shape: f32[256,128], index: 3, kind: output, shape index: {}]  }
   0x1   :  { %10 = vsyncpa [#allocation3 + $0x1], 0  ;;  %s851_s12 = smov 0   ;;  %s853_s13 = smov 0  }
   0x2   :  { %s855_s14 = smov 0   ;;  %s857_s15 = smov 0  }
   0x3 LB: > { %s872_s16 = sadd.s32 4294967295, %s825_s15   ;;  %s624_s17 = sadd.s32 4294967294, %s825_s15   ;;  %s825_s15 = sphi %s857_s15, %s1059_s15   ;;  %s821_s14 = sphi %s855_s14, %s1058_s14   ;;  %s817_s13 = sphi %s853_s13, %s1057_s13   ;;  %s813_s12 = sphi %s851_s12, %s1056_s12  }
   0x4   : > { %s876_s18 = sadd.s32 1, %s825_s15   ;;  %s96_s19 = sadd.s32 1, %s821_s14 }
   0x5   : > { %s93_s20 = ssub.s32 %s825_s15, %s876_s18  ;;  %p106_p0 = scmp.ne.s32.totalorder %s821_s14, %s817_s13 }
   0x6   : > { %p94_p1 = scmp.eq.s32.totalorder %s93_s20, 0  ;;  %p107_p2 = scmp.eq.s32.totalorder %s872_s16, 1 }
   0x7   : > { %p112_p3 = scmp.ne.s32.totalorder %s817_s13, %s813_s12  ;;  %p113_p4 = scmp.eq.s32.totalorder %s624_s17, 1 }
   0x8   : > { %s887_s21 = scalar_select %p94_p1, %s821_s14, %s96_s19  }
   0x9   : > { %p889_p5 = por %p107_p2, %p106_p0  ;;  %p893_p6 = por %p113_p4, %p112_p3 }
   0xa   : > { %p627_p7 = scmp.ge.s32.totalorder %s825_s15, 1  ;;  %p152_p8 = scmp.lt.s32.totalorder %s825_s15, 3 }
   0xc   : > { %p153_p9 = pnand %p627_p7, %p152_p8 }
   0xd   : > { %s629_s24 = sshll.u32 (!%p153_p9), %s872_s16, 4  ;;  %v322_v0 = vld [vmem:[%s1051_s1] sm:$0xff] (!%p153_p9)  ;;  %v323_v1 = vld [vmem:[%s1051_s1 + $0x8] sm:$0xff] (!%p153_p9)  ;;  %v324_v2 = vld [vmem:[%s1051_s1 + $0x10] sm:$0xff] (!%p153_p9)  ;;  %v827_v3 = vmov (!%p153_p9), 0   ;;  %vm326_vm0 = vcmask (!%p153_p9), 261120  }
   0xe   : > { %156 = sbr.rel (%p153_p9) target bundleno = 411 (0x19b), region = 32  ;;  %762 = vset.pattern.permute.xlu1 (!%p153_p9), %v827_v3  ;;  %761 = vset.pattern.permute.xlu0 (!%p153_p9), %v827_v3  ;;  %p182_p10 = scmp.lt.s32.totalorder (!%p153_p9), %s629_s24, 31  ;;  %v707_v4 = vpack.c.bf16 (!%p153_p9), %v323_v1, %v322_v0  ;;  %v325_v5 = vld [vmem:[%s1051_s1 + $0x18] sm:$0xff] (!%p153_p9) }
   0xf   : > { %v711_v6 = vpack.c.bf16 (!%p153_p9), %v325_v5, %v324_v2  ;;  %s178_s19 = sand.u32 (!%p153_p9), 1, %s817_s13   ;;  %s654_s25 = sshll.u32 (!%p153_p9), %s872_s16, 11 }
  0x10   : > { %708 = vmatprep.subr.bf16.mxu0 (!%p153_p9), %v707_v4  ;;  %715 = vmatprep.subr.bf16.mxu1 (!%p153_p9), %v707_v4  ;;  %s628_s20 = sshll.u32 (!%p153_p9), %s178_s19, 7  ;;  %s999_s29 = scalar_lea.hbm (!%p153_p9), %s1053_s3, %s654_s25 }
  0x11   : > { %710 = vmatpush3.bf16.msra.mxu0 (!%p153_p9), %v707_v4  ;;  %717 = vmatpush3.bf16.msra.mxu1 (!%p153_p9), %v707_v4  ;;  %s1009_s16 = scalar_lea.sflag (!%p153_p9), [#allocation3], %s178_s19  ;;  %s828_s4 = smov (!%p153_p9), [#allocation2]  }
  0x12   : > { %712 = vmatprep.subr.bf16.mxu0 (!%p153_p9), %v711_v6  ;;  %716 = vmatprep.subr.bf16.mxu1 (!%p153_p9), %v711_v6  ;;  %s767_s5 = sshll.u32 (!%p153_p9), %s828_s4, 4  ;;  %s768_s5 = int_to_ptr.vmem [resolvable:$false] %s767_s5 }
  0x15   : > { %s1061_s24 = smov (!%p182_p10, %s629_s24), 31  ;;  %714 = vmatpush3.bf16.msra.mxu0 %v711_v6  ;;  %718 = vmatpush3.bf16.msra.mxu1 %v711_v6 }
  0x16   : > { %s630_s6 = sshll.u32 %s1061_s24, 3  ;;  %s980_s24 = scalar_lea.vmem [#allocation2], %s628_s20 }
  0x17   : > { %s920_s9 = scalar_lea.vmem %s1052_s2, %s630_s6  ;;  %s943_s17 = scalar_lea.vmem %s1050_s0, %s630_s6 }
  0x18   : > { %v211_v7 = vld [vmem:[%s920_s9 + $0x8] sm:$0xff]  ;;  %v210_v8 = vld [vmem:[%s920_s9] sm:$0xff]  ;;  %v220_v11 = vld [vmem:[%s920_s9 + $0x50] sm:$0xff]  ;;  %s550_s26 = sshll.u32 %s980_s24, 4  ;;  %s769_s6 = scalar_lea.vmem %s768_s5, 4096  ;;  %s1001_s26 = int_to_ptr.vmem [resolvable:$true] %s550_s26 }
  0x19   : > { %233 = vperm.xlu1 %762, %v211_v7   ;;  %228 = vperm.xlu0 %761, %v210_v8   ;;  %v219_v9 = vld [vmem:[%s920_s9 + $0x48] sm:$0xff]  ;;  %v218_v10 = vld [vmem:[%s920_s9 + $0x40] sm:$0xff]  ;;  %v212_v12 = vld [vmem:[%s920_s9 + $0x10] sm:$0xff]  ;;  %s763_s30 = scalar_lea.vmem %s1001_s26, 2048  ;;  %p770_p0 = scmp.lt.s32.totalorder %s1001_s26, %s768_s5 }
  0x1a   : > { %v221_v13 = vld [vmem:[%s920_s9 + $0x58] sm:$0xff]  ;;  %v222_v15 = vld [vmem:[%s920_s9 + $0x60] sm:$0xff]  ;;  %v223_v17 = vld [vmem:[%s920_s9 + $0x68] sm:$0xff]  ;;  %p764_p11 = scmp.ne.s32.totalorder %s1001_s26, %s763_s30  ;;  %p771_p1 = scmp.lt.s32.totalorder %s769_s6, %s763_s30 }
  0x1b   : > { %v213_v14 = vld [vmem:[%s920_s9 + $0x18] sm:$0xff]  ;;  %v214_v16 = vld [vmem:[%s920_s9 + $0x20] sm:$0xff]  ;;  %v215_v18 = vld [vmem:[%s920_s9 + $0x28] sm:$0xff] }
  0x1c   : > { %v224_v19 = vld [vmem:[%s920_s9 + $0x70] sm:$0xff]  ;;  %v225_v21 = vld [vmem:[%s920_s9 + $0x78] sm:$0xff]  ;;  %v195_v23 = vld [vmem:[%s943_s17 + $0x8] sm:$0xff]  ;;  %p765_p12 = pnand %p764_p11, %p889_p5  ;;  %p772_p2 = por %p771_p1, %p770_p0 }
  0x1d   : > { %273 = vperm.xlu1 %762, %v219_v9   ;;  %268 = vperm.xlu0 %761, %v218_v10   ;;  %v216_v20 = vld [vmem:[%s920_s9 + $0x30] sm:$0xff]  ;;  %v217_v22 = vld [vmem:[%s920_s9 + $0x38] sm:$0xff]  ;;  %v194_v24 = vld [vmem:[%s943_s17] sm:$0xff] }
  0x1e   : > { %v203_v29 = vld [vmem:[%s943_s17 + $0x48] sm:$0xff]  ;;  %v202_v30 = vld [vmem:[%s943_s17 + $0x40] sm:$0xff]  ;;  %v204_v35 = vld [vmem:[%s943_s17 + $0x50] sm:$0xff]  ;;  %p766_p13 = pneg %p765_p12 }
  0x1f   : > { %v196_v36 = vld [vmem:[%s943_s17 + $0x10] sm:$0xff]  ;;  %v205_v41 = vld [vmem:[%s943_s17 + $0x58] sm:$0xff]  ;;  %v206_v47 = vld [vmem:[%s943_s17 + $0x60] sm:$0xff] }
  0x20   : > { %v197_v42 = vld [vmem:[%s943_s17 + $0x18] sm:$0xff]  ;;  %v198_v48 = vld [vmem:[%s943_s17 + $0x20] sm:$0xff]  ;;  %v207_v53 = vld [vmem:[%s943_s17 + $0x68] sm:$0xff]  ;;  %p773_p3 = pnand %p772_p2, %p766_p13 }
  0x21   : > { %278 = vperm.xlu1 %762, %v220_v11   ;;  %238 = vperm.xlu0 %761, %v212_v12   ;;  %v199_v54 = vld [vmem:[%s943_s17 + $0x28] sm:$0xff]  ;;  %v208_v59 = vld [vmem:[%s943_s17 + $0x70] sm:$0xff]  ;;  %v209_v1 = vld [vmem:[%s943_s17 + $0x78] sm:$0xff] }
  0x22   : > { %v200_v60 = vld [vmem:[%s943_s17 + $0x30] sm:$0xff]  ;;  %v201_v2 = vld [vmem:[%s943_s17 + $0x38] sm:$0xff] }
  0x25   : > { %283 = vperm.xlu1 %762, %v221_v13   ;;  %243 = vperm.xlu0 %761, %v213_v14  }
  0x29   : > { %288 = vperm.xlu1 %762, %v222_v15   ;;  %248 = vperm.xlu0 %761, %v214_v16  }
  0x2d   : > { %293 = vperm.xlu1 %762, %v223_v17   ;;  %253 = vperm.xlu0 %761, %v215_v18  }
  0x31   : > { %298 = vperm.xlu1 %762, %v224_v19   ;;  %258 = vperm.xlu0 %761, %v216_v20  }
  0x35   : > { %303 = vperm.xlu1 %762, %v225_v21   ;;  %263 = vperm.xlu0 %761, %v217_v22  }
  0x98   : > { %v234_v25 = vpop.permute.xlu1 %233  ;;  %v229_v26 = vpop.permute.xlu0 %228 }
  0x99   : > { %v307_v27 = vmul.f32 %v234_v25, %v195_v23  ;;  %v306_v28 = vmul.f32 %v229_v26, %v194_v24 }
  0x9b   : > { %683 = vmatprep.mubr.msk.f32.mxu0 %vm326_vm0, %v306_v28 }
  0x9c   : > { %v274_v31 = vpop.permute.xlu1 %273  ;;  %v269_v32 = vpop.permute.xlu0 %268  ;;  %684 = vmatmul.mubr.msk.f32.vlgmr.msra.gmra.mrb[0].mxu0 %vm326_vm0, %v307_v27 }
  0x9d   : > { %v315_v33 = vmul.f32 %v274_v31, %v203_v29  ;;  %v314_v34 = vmul.f32 %v269_v32, %v202_v30 }
  0x9f   : > { %695 = vmatprep.mubr.msk.f32.mxu1 %vm326_vm0, %v314_v34 }
  0xa0   : > { %v279_v37 = vpop.permute.xlu1 %278  ;;  %v239_v38 = vpop.permute.xlu0 %238  ;;  %696 = vmatmul.mubr.msk.f32.vlgmr.msra.gmra.mrb[0].mxu1 %vm326_vm0, %v315_v33 }
  0xa1   : > { %v316_v39 = vmul.f32 %v279_v37, %v204_v35  ;;  %v308_v40 = vmul.f32 %v239_v38, %v196_v36 }
  0xa3   : > { %686 = vmatprep.mubr.msk.f32.mxu0 %vm326_vm0, %v308_v40  ;;  %698 = vmatprep.mubr.msk.f32.mxu1 %vm326_vm0, %v316_v39 }
  0xa4   : > { %v284_v43 = vpop.permute.xlu1 %283  ;;  %v244_v44 = vpop.permute.xlu0 %243 }
  0xa5   : > { %v317_v45 = vmul.f32 %v284_v43, %v205_v41  ;;  %v309_v46 = vmul.f32 %v244_v44, %v197_v42 }
  0xa7   : > { %687 = vmatmul.mubr.msk.f32.gmra.mrb[2].mxu0 %vm326_vm0, %v309_v46  ;;  %699 = vmatmul.mubr.msk.f32.gmra.mrb[2].mxu1 %vm326_vm0, %v317_v45 }
  0xa8   : > { %v289_v49 = vpop.permute.xlu1 %288  ;;  %v249_v50 = vpop.permute.xlu0 %248 }
  0xa9   : > { %v318_v51 = vmul.f32 %v289_v49, %v206_v47  ;;  %v310_v52 = vmul.f32 %v249_v50, %v198_v48 }
  0xab   : > { %689 = vmatprep.mubr.msk.f32.mxu0 %vm326_vm0, %v310_v52  ;;  %701 = vmatprep.mubr.msk.f32.mxu1 %vm326_vm0, %v318_v51 }
  0xac   : > { %v294_v55 = vpop.permute.xlu1 %293  ;;  %v254_v56 = vpop.permute.xlu0 %253 }
  0xad   : > { %v319_v57 = vmul.f32 %v294_v55, %v207_v53  ;;  %v311_v58 = vmul.f32 %v254_v56, %v199_v54 }
  0xaf   : > { %690 = vmatmul.mubr.msk.f32.gmra.mrb[4].mxu0 %vm326_vm0, %v311_v58  ;;  %702 = vmatmul.mubr.msk.f32.gmra.mrb[4].mxu1 %vm326_vm0, %v319_v57 }
  0xb0   : > { %v299_v61 = vpop.permute.xlu1 %298  ;;  %v259_v62 = vpop.permute.xlu0 %258 }
  0xb1   : > { %v320_v63 = vmul.f32 %v299_v61, %v208_v59  ;;  %v312_v0 = vmul.f32 %v259_v62, %v200_v60 }
  0xb3   : > { %692 = vmatprep.mubr.msk.f32.mxu0 %vm326_vm0, %v312_v0  ;;  %704 = vmatprep.mubr.msk.f32.mxu1 %vm326_vm0, %v320_v63 }
  0xb4   : > { %v304_v3 = vpop.permute.xlu1 %303  ;;  %v264_v4 = vpop.permute.xlu0 %263 }
  0xb5   : > { %v321_v5 = vmul.f32 %v304_v3, %v209_v1  ;;  %v313_v6 = vmul.f32 %v264_v4, %v201_v2 }
  0xb7   : > { %693 = vmatmul.mubr.msk.f32.gmra.mrb[6].mxu0 %vm326_vm0, %v313_v6  ;;  %705 = vmatmul.mubr.msk.f32.gmra.mrb[6].mxu1 %vm326_vm0, %v321_v5 }
 0x16f   : > { %v685_v7 = vpop.f32.mrb[0].mxu0 }
 0x170   : > { %521 = vst [vmem:[%s980_s24 + $0x8] sm:$0xff] %v685_v7  ;;  %v441_v8 = vpop.f32.mrb[1].mxu0 }
 0x171   : > { %520 = vst [vmem:[%s980_s24] sm:$0xff] %v441_v8 }
 0x173   : > { %v697_v9 = vpop.f32.mrb[0].mxu1 }
 0x174   : > { %529 = vst [vmem:[%s980_s24 + $0x48] sm:$0xff] %v697_v9  ;;  %v481_v10 = vpop.f32.mrb[1].mxu1 }
 0x175   : > { %528 = vst [vmem:[%s980_s24 + $0x40] sm:$0xff] %v481_v10 }
 0x17a   : > { %v688_v11 = vpop.f32.mrb[2].mxu0  ;;  %v700_v12 = vpop.f32.mrb[2].mxu1 }
 0x17b   : > { %523 = vst [vmem:[%s980_s24 + $0x18] sm:$0xff] %v688_v11  ;;  %531 = vst [vmem:[%s980_s24 + $0x58] sm:$0xff] %v700_v12  ;;  %v451_v13 = vpop.f32.mrb[3].mxu0  ;;  %v491_v14 = vpop.f32.mrb[3].mxu1 }
 0x17c   : > { %522 = vst [vmem:[%s980_s24 + $0x10] sm:$0xff] %v451_v13  ;;  %530 = vst [vmem:[%s980_s24 + $0x50] sm:$0xff] %v491_v14 }
 0x182   : > { %v691_v15 = vpop.f32.mrb[4].mxu0  ;;  %v703_v16 = vpop.f32.mrb[4].mxu1 }
 0x183   : > { %525 = vst [vmem:[%s980_s24 + $0x28] sm:$0xff] %v691_v15  ;;  %533 = vst [vmem:[%s980_s24 + $0x68] sm:$0xff] %v703_v16  ;;  %v461_v17 = vpop.f32.mrb[5].mxu0  ;;  %v501_v18 = vpop.f32.mrb[5].mxu1 }
 0x184   : > { %524 = vst [vmem:[%s980_s24 + $0x20] sm:$0xff] %v461_v17  ;;  %532 = vst [vmem:[%s980_s24 + $0x60] sm:$0xff] %v501_v18 }
 0x18a   : > { %v694_v19 = vpop.f32.mrb[6].mxu0  ;;  %v706_v20 = vpop.f32.mrb[6].mxu1 }
 0x18b   : > { %527 = vst [vmem:[%s980_s24 + $0x38] sm:$0xff] %v694_v19  ;;  %535 = vst [vmem:[%s980_s24 + $0x78] sm:$0xff] %v706_v20  ;;  %v471_v21 = vpop.f32.mrb[7].mxu0  ;;  %v511_v22 = vpop.f32.mrb[7].mxu1 }
 0x18c   : > { %526 = vst [vmem:[%s980_s24 + $0x30] sm:$0xff] %v471_v21  ;;  %534 = vst [vmem:[%s980_s24 + $0x70] sm:$0xff] %v511_v22 }
 0x18d   : > { %776 = shalt.err (!%p773_p3)
}
 0x18e   : > { %s777_s7 = scalar_lea.hbm %s999_s29, 2048  ;;  %s781_s10 = scalar_lea.hbm %s1053_s3, 4096 }
 0x18f   : > { %p778_p4 = scmp.ne.s32.totalorder %s999_s29, %s777_s7  ;;  %p782_p9 = scmp.lt.u32.totalorder %s999_s29, %s1053_s3 }
 0x190   : > { %p783_p10 = scmp.lt.u32.totalorder %s781_s10, %s777_s7  ;;  %p785_p12 = scmp.lt.u32.totalorder %s777_s7, %s999_s29 }
 0x191   : > { %p779_p7 = pnand %p778_p4, %p889_p5 }
 0x192   : > { %p784_p11 = por %p783_p10, %p782_p9 }
 0x193   : > { %p780_p8 = pneg %p779_p7 }
 0x194   : > { %p786_p13 = por %p785_p12, %p784_p11 }
 0x196   : > { %p787_p0 = pnand %p786_p13, %p780_p8 }
 0x198   : > { %790 = shalt.err (!%p787_p0)
}
 0x199   : > { %s829_s19 = smov 128   ;;  %s830_s20 = smov 8  }
 0x19a   : > { %719 = dma.vmem_to_hbm [thread:$0]  (%p889_p5), %s1001_s26, 2048, %s999_s29, %s1009_s16, %s829_s19, %s829_s19, %s830_s20  }
 0x19b PF: > { %p725_p1 = scmp.ge.s32.totalorder %s825_s15, 2  ;;  %s565_s24 = sand.u32 1, %s813_s12  }
 0x19c   : > { %s566_s25 = scalar_lea.sflag [#allocation3], %s565_s24 }
 0x19d   : > { %p722_p2 = pnand %p725_p1, %p893_p6 }
 0x19f   : > { %808 = dma.done.wait (!%p722_p2), %s566_s25, 2048  }
 0x1a0   : > { %810 = vsyncadd (!%p722_p2), %s566_s25, 4294965248  ;;  %p13_p3 = scmp.ge.s32.totalorder %s876_s18, 4   ;;  %s1056_s12 = smov %s817_s13 }
 0x1a1   : > { %s1057_s13 = smov %s821_s14  ;;  %s1058_s14 = smov %s887_s21 }
 0x1a2   : > { %s1059_s15 = smov %s876_s18  ;;  %15 = sbr.rel (!%p13_p3) target bundleno = 3 (0x3), region = 70 }
 0x1a9   :  { %571 = vsyncpa [#allocation3], 1 }
 0x1aa   :  { %573 = vsyncpa [#allocation3 + $0x1], 1 }

</bundles_post_ra>
